<compile_context>
chip_gen: v5e
topology: v5e:2x2
jax: 0.10.0
libtpu: 0.0.40
codegen_flags: <defaults>
</compile_context>

<pallas_src>
import math

import jax
import jax.numpy as jnp
from jax import lax
from jax.experimental import pallas as pl
from jax.experimental.pallas import tpu as pltpu

NUM_BINS = 34
KHALF = 64            # slots reserved for the hi half of the split table
KPAD = 2 * KHALF      # 128-deep contraction: hi rows [0,34), lo rows [64,98)
BIN_LO = 2.4
BIN_WIDTH = 0.4


def _bins_from_dists(d):
    """f32 distances -> int32 bin ids, exactly mirroring the torch forward."""
    x = jnp.clip((d - BIN_LO) / BIN_WIDTH, 0.0, float(NUM_BINS - 1))
    return jnp.round(x).astype(jnp.int32)


def _radial_kernel_tokens_major(d_ref, wt_ref, o_ref):
    # d_ref : (T, 1)      distances for this token tile
    # wt_ref: (KPAD, E)   packed hi/lo bf16 table (resident, constant index_map)
    # o_ref : (T, E)      lane-dense output (E % 128 == 0 on this path)
    d = d_ref[...]                                               # (T, 1) f32
    bins = _bins_from_dists(d)                                   # (T, 1) i32
    t = d.shape[0]
    k_iota = lax.broadcasted_iota(jnp.int32, (t, KPAD), 1)       # (T, K)
    # double-hot: selects the hi row and the matching lo row in one matmul
    onehot = ((k_iota == bins) | (k_iota == bins + KHALF)).astype(jnp.bfloat16)
    out = jnp.dot(onehot, wt_ref[...], preferred_element_type=jnp.float32)
    o_ref[...] = out                                             # (T, E) f32


def _radial_kernel_e_major(d_ref, wt_ref, o_ref):
    # d_ref : (1, T)      distances for this token tile
    # wt_ref: (E, KPAD)   packed hi/lo bf16 table (resident)
    # o_ref : (E, T)      lane-dense output (T is a multiple of 128)
    d = d_ref[...]                                               # (1, T) f32
    bins = _bins_from_dists(d)                                   # (1, T) i32
    t = d.shape[1]
    k_iota = lax.broadcasted_iota(jnp.int32, (KPAD, t), 0)       # (K, T)
    onehot = ((k_iota == bins) | (k_iota == bins + KHALF)).astype(jnp.bfloat16)
    out = jnp.dot(wt_ref[...], onehot, preferred_element_type=jnp.float32)
    o_ref[...] = out                                             # (E, T) f32


def _pack_table(emb_weight, tokens_major):
    """Split the f32 table into bf16 hi/lo halves packed along the bin axis."""
    w32 = emb_weight.astype(jnp.float32)
    w_hi = w32.astype(jnp.bfloat16)
    w_lo = (w32 - w_hi.astype(jnp.float32)).astype(jnp.bfloat16)
    tbl = jnp.zeros((KPAD, w32.shape[1]), jnp.bfloat16)
    tbl = tbl.at[:NUM_BINS].set(w_hi).at[KHALF:KHALF + NUM_BINS].set(w_lo)
    return tbl if tokens_major else tbl.T


def radial_kernel(dists, emb_weight, *, num_freq, in_dim, out_dim,
                  max_tile_tokens=2048):
    """dists: (..., 1) float; emb_weight: (34, num_freq*in_dim*out_dim)."""
    assert dists.shape[-1] == 1, "trailing singleton dim expected (squeeze(-2))"
    lead = dists.shape[:-1]
    total = math.prod(lead) if lead else 1
    E = num_freq * in_dim * out_dim
    assert emb_weight.shape == (NUM_BINS, E)

    # Token tile: multiple of 128 lanes, sized so double-buffered in/out tiles
    # (plus headroom for the one-hot intermediate) stay under ~12 MiB — safe on
    # v7x's 32 MiB scoped-VMEM default and plenty for v5e/v6e.
    budget = 12 * 1024 * 1024
    per_token = 4 * (E * 4 + 4)
    tile = max(128, min(max_tile_tokens, (budget // per_token) // 128 * 128))
    total_up = (total + 127) // 128 * 128
    tile = min(tile, total_up)                 # small problems -> 1 grid step
    grid_t = (total + tile - 1) // tile
    total_pad = grid_t * tile

    d = dists.reshape(total).astype(jnp.float32)
    if total_pad != total:
        d = jnp.pad(d, (0, total_pad - total), constant_values=BIN_LO)

    tokens_major = (E % 128 == 0)
    tbl = _pack_table(emb_weight, tokens_major)

    cost = pl.CostEstimate(
        flops=2 * total_pad * KPAD * E,
        transcendentals=0,
        bytes_accessed=total_pad * 4 + total_pad * E * 4 + KPAD * E * 2,
    )
    cparams = pltpu.CompilerParams(
        dimension_semantics=("parallel",),
        vmem_limit_bytes=32 * 1024 * 1024,
    )

    if tokens_major:
        # Output lands directly in consumer layout: no wrapper transpose.
        out_flat = pl.pallas_call(
            _radial_kernel_tokens_major,
            out_shape=jax.ShapeDtypeStruct((total_pad, E), jnp.float32),
            grid=(grid_t,),
            in_specs=[
                pl.BlockSpec((tile, 1), lambda t: (t, 0)),
                pl.BlockSpec((KPAD, E), lambda t: (0, 0)),   # resident table
            ],
            out_specs=pl.BlockSpec((tile, E), lambda t: (t, 0)),
            compiler_params=cparams,
            cost_estimate=cost,
        )(d.reshape(total_pad, 1), tbl)
    else:
        # E < 128 (or not 128-aligned): keep stores lane-dense along tokens and
        # do the cheap layout plumbing outside the kernel.
        out_et = pl.pallas_call(
            _radial_kernel_e_major,
            out_shape=jax.ShapeDtypeStruct((E, total_pad), jnp.float32),
            grid=(grid_t,),
            in_specs=[
                pl.BlockSpec((1, tile), lambda t: (0, t)),
                pl.BlockSpec((E, KPAD), lambda t: (0, 0)),   # resident table
            ],
            out_specs=pl.BlockSpec((E, tile), lambda t: (0, t)),
            compiler_params=cparams,
            cost_estimate=cost,
        )(d.reshape(1, total_pad), tbl)
        out_flat = out_et.T                                   # (total_pad, E)

    out = out_flat[:total]
    return out.reshape(*lead, out_dim, 1, in_dim, 1, num_freq)


def reference(dists, emb_weight, num_freq, in_dim, out_dim):
    """Pure-JAX reference mirroring the torch forward."""
    d = dists[..., 0]
    bins = jnp.round(
        jnp.clip((d - BIN_LO) / BIN_WIDTH, 0.0, float(NUM_BINS - 1))
    ).astype(jnp.int32)
    rows = emb_weight[bins]                                   # (..., E)
    return rows.reshape(*d.shape, out_dim, 1, in_dim, 1, num_freq)


if __name__ == "__main__":
    key = jax.random.PRNGKey(0)
    B, N, M = 2, 8, 8
    # E = 64 exercises the E-major path; E = 128 the tokens-major path.
    for (num_freq, in_dim, out_dim) in [(4, 4, 4), (8, 4, 4)]:
        E = num_freq * in_dim * out_dim
        key, kd, kw = jax.random.split(key, 3)
        # pairwise distances spanning the binned range [2.4, ~15.6]
        dists = 2.0 + 15.0 * jax.random.uniform(kd, (B, N, M, 1),
                                                dtype=jnp.float32)
        emb_weight = jax.random.normal(kw, (NUM_BINS, E), jnp.float32)

        out = radial_kernel(dists, emb_weight,
                            num_freq=num_freq, in_dim=in_dim, out_dim=out_dim)
        jax.block_until_ready(out)

        ref = reference(dists, emb_weight, num_freq, in_dim, out_dim)
        assert out.shape == (B, N, M, out_dim, 1, in_dim, 1, num_freq)
        # hi/lo bf16 split reconstructs the f32 table to ~2^-16 relative error.
        assert jnp.allclose(out, ref, atol=1e-6, rtol=1e-4), (
            f"mismatch for E={E}: max abs err "
            f"{jnp.max(jnp.abs(out - ref)):.3e}")
    print("KERNEL_OK")
</pallas_src>

<mosaic_0001>
module attributes {stable_mosaic.version = 11 : i64} {
  func.func @_radial_kernel_e_major(%arg0: i32, %arg1: memref<1x128xf32, #tpu.memory_space<vmem>>, %arg2: memref<64x128xbf16, #tpu.memory_space<vmem>>, %arg3: memref<64x128xf32, #tpu.memory_space<vmem>>) attributes {dimension_semantics = [#tpu.dimension_semantics<parallel>], iteration_bounds = array<i64: 1>, scalar_prefetch = 0 : i64, scratch_operands = 0 : i64, tpu.core_type = #tpu.core_type<tc>, window_params = [{transform_indices = @transform_0, window_bounds = array<i64: 1, 128>}, {pipeline_mode = #tpu.pipeline_mode<synchronous>, transform_indices = @transform_1, window_bounds = array<i64: 64, 128>}, {transform_indices = @transform_2, window_bounds = array<i64: 64, 128>}]} {
    %c0 = arith.constant 0 : index
    %c0_0 = arith.constant 0 : index
    %0 = vector.load %arg1[%c0, %c0_0] : memref<1x128xf32, #tpu.memory_space<vmem>>, vector<1x128xf32>
    %cst = arith.constant 2.400000e+00 : f32
    %1 = vector.broadcast %cst : f32 to vector<1x128xf32>
    %2 = arith.subf %0, %1 : vector<1x128xf32>
    %cst_1 = arith.constant 4.000000e-01 : f32
    %3 = vector.broadcast %cst_1 : f32 to vector<1x128xf32>
    %4 = arith.divf %2, %3 : vector<1x128xf32>
    %cst_2 = arith.constant 0.000000e+00 : f32
    %cst_3 = arith.constant 3.300000e+01 : f32
    %5 = vector.broadcast %cst_2 : f32 to vector<1x128xf32>
    %6 = arith.maximumf %5, %4 : vector<1x128xf32>
    %7 = vector.broadcast %cst_3 : f32 to vector<1x128xf32>
    %8 = arith.minimumf %7, %6 : vector<1x128xf32>
    %9 = math.roundeven %8 : vector<1x128xf32>
    %10 = arith.fptosi %9 : vector<1x128xf32> to vector<1x128xi32>
    %11 = tpu.iota {dimensions = array<i32: 0>} : vector<128x128xi32>
    %12 = vector.broadcast %10 : vector<1x128xi32> to vector<128x128xi32>
    %13 = arith.cmpi eq, %11, %12 : vector<128x128xi32>
    %c64_i32 = arith.constant 64 : i32
    %14 = vector.broadcast %c64_i32 : i32 to vector<1x128xi32>
    %15 = arith.addi %10, %14 : vector<1x128xi32>
    %16 = vector.broadcast %15 : vector<1x128xi32> to vector<128x128xi32>
    %17 = arith.cmpi eq, %11, %16 : vector<128x128xi32>
    %18 = arith.ori %13, %17 : vector<128x128xi1>
    %19 = arith.extui %18 : vector<128x128xi1> to vector<128x128xi32>
    %20 = arith.sitofp %19 : vector<128x128xi32> to vector<128x128xf32>
    %21 = arith.truncf %20 : vector<128x128xf32> to vector<128x128xbf16>
    %c0_4 = arith.constant 0 : index
    %c0_5 = arith.constant 0 : index
    %22 = vector.load %arg2[%c0_4, %c0_5] : memref<64x128xbf16, #tpu.memory_space<vmem>>, vector<64x128xbf16>
    %cst_6 = arith.constant dense<0.000000e+00> : vector<64x128xf32>
    %23 = tpu.matmul %22, %21, %cst_6 {dimension_numbers = #tpu.dot_dimension_numbers<[1], [0], [0], [1], [0, 0, 1, 1], [], []>} : vector<64x128xbf16>, vector<128x128xbf16>, vector<64x128xf32> -> vector<64x128xf32>
    %c0_7 = arith.constant 0 : index
    %c0_8 = arith.constant 0 : index
    %24 = vector.load %arg3[%c0_7, %c0_8] : memref<64x128xf32, #tpu.memory_space<vmem>>, vector<64x128xf32>
    tpu.vector_store %arg3[%c0_7, %c0_8], %23 {strides = array<i32>} : memref<64x128xf32, #tpu.memory_space<vmem>>, vector<64x128xf32>,
    return
  }
  func.func @transform_0(%arg0: i32) -> (i32, i32) {
    %c0_i32 = arith.constant 0 : i32
    %c0_i32_0 = arith.constant 0 : i32
    return %c0_i32, %arg0 : i32, i32
  }
  func.func @transform_1(%arg0: i32) -> (i32, i32) {
    %c0_i32 = arith.constant 0 : i32
    %c0_i32_0 = arith.constant 0 : i32
    %c0_i32_1 = arith.constant 0 : i32
    return %c0_i32, %c0_i32_0 : i32, i32
  }
  func.func @transform_2(%arg0: i32) -> (i32, i32) {
    %c0_i32 = arith.constant 0 : i32
    %c0_i32_0 = arith.constant 0 : i32
    return %c0_i32, %arg0 : i32, i32
  }
}

</mosaic_0001>

<bundles_post_ra>
// kernel: tpu_custom_call.1
= control target key start
LH: loop header
LB: loop body
LE: loop exit
PB: predicated region body
PF: predicated region fallthrough
CT: control target
= control target key end

     0   :  { %7 = vsyncpa [#allocation3], 0  ;;  %s577_s0 = inlined_call_operand.hbm [shape: f32[1,128], index: 0, kind: input, shape index: {}]   ;;  %s578_s1 = inlined_call_operand.hbm [shape: bf16[64,128], index: 1, kind: input, shape index: {}]   ;;  %s579_s2 = inlined_call_operand.hbm [shape: f32[64,128], index: 2, kind: output, shape index: {}]  }
   0x1   :  { %8 = vsyncpa [#allocation6], 0 }
   0x2   :  { %9 = vsyncpa [#allocation4], 0  ;;  %s15_s11 = sshll.u32 %s577_s0, 4  ;;  %s421_s12 = smov [#allocation2]   ;;  %s16_s11 = int_to_ptr.hbm [resolvable:$true] %s15_s11 }
   0x3   :  { %s17_s13 = sshll.u32 %s421_s12, 4  ;;  %s25_s16 = sshll.u32 %s578_s1, 4  ;;  %s18_s13 = int_to_ptr.vmem [resolvable:$true] %s17_s13  ;;  %s26_s16 = int_to_ptr.hbm [resolvable:$true] %s25_s16 }
   0x4   :  { %20 = dma.hbm_to_vmem [thread:$0]  %s16_s11, 16, %s18_s13, [#allocation3]  }
   0x5   :  { %s422_s17 = smov [#allocation5]   ;;  %s423_s19 = smov 64  }
   0x6   :  { %s27_s18 = sshll.u32 %s422_s17, 4  ;;  %s424_s20 = smov 4   ;;  %s28_s18 = int_to_ptr.vmem [resolvable:$true] %s27_s18 }
   0x7   :  { %33 = dma.hbm_to_vmem [thread:$0]  %s26_s16, 512, %s28_s18, [#allocation6], %s423_s19, %s423_s19, %s424_s20  }
   0x8   :  { %415 = dma.done.wait [#allocation3], 16  }
   0x9   :  { %416 = vsyncadd [#allocation3], 4294967280 }
   0xa   :  { %417 = dma.done.wait [#allocation6], 512  }
   0xb   :  { %418 = vsyncadd [#allocation6], 4294966784  ;;  %v425_v0 = vmov 0.4   ;;  %v42_v3 = vld [vmem:[#allocation2] sm:$0x1]  ;;  %v55_v8 = vlaneseq }
   0xc   :  { %341 = vrcp.f32 %v425_v0  ;;  %v252_v6 = vadd.f32 -2.4, %v42_v3  ;;  %v426_v25 = vmov 1.0|1.0   ;;  %v301_v37 = vld [vmem:[#allocation5] sm:$0xff]  ;;  %v302_v38 = vld [vmem:[#allocation5 + $0x8] sm:$0xff] }
   0xd   :  { %v451_v12 = vshrl.u32 %v55_v8, 7  ;;  %v303_v39 = vld [vmem:[#allocation5 + $0x10] sm:$0xff]  ;;  %v304_v40 = vld [vmem:[#allocation5 + $0x18] sm:$0xff]  ;;  %s427_s0 = smov [#allocation7]   ;;  %s238_s23 = sshll.u32 %s579_s2, 4  ;;  %s239_s23 = int_to_ptr.hbm [resolvable:$true] %s238_s23 }
   0xe   :  { %s236_s1 = sshll.u32 %s427_s0, 4  ;;  %s428_s24 = smov 128   ;;  %s237_s1 = int_to_ptr.vmem [resolvable:$true] %s236_s1 }
   0xf   :  { %v70_v15 = vadd.s32 112, %v451_v12  ;;  %v71_v16 = vadd.s32 120, %v451_v12  ;;  %v68_v19 = vadd.s32 96, %v451_v12  ;;  %v69_v21 = vadd.s32 104, %v451_v12  ;;  %s429_s25 = smov 8  }
  0x10   :  { %v66_v22 = vadd.s32 80, %v451_v12  ;;  %v67_v23 = vadd.s32 88, %v451_v12  ;;  %v64_v24 = vadd.s32 64, %v451_v12  ;;  %v65_v26 = vadd.s32 72, %v451_v12 }
  0x11   :  { %v62_v27 = vadd.s32 48, %v451_v12  ;;  %v63_v28 = vadd.s32 56, %v451_v12  ;;  %v60_v29 = vadd.s32 32, %v451_v12  ;;  %v61_v30 = vadd.s32 40, %v451_v12 }
  0x12   :  { %v342_v1 = vpop.eup %341  ;;  %v58_v32 = vadd.s32 16, %v451_v12  ;;  %v59_v33 = vadd.s32 24, %v451_v12  ;;  %v57_v36 = vadd.s32 8, %v451_v12 }
  0x13   :  { %v45_v2 = vmul.f32 0.4, %v342_v1  ;;  %vm49_vm0 = vweird.f32 %v342_v1 }
  0x15   :  { %v46_v4 = vsub.f32 1.0, %v45_v2 }
  0x17   :  { %v47_v5 = vmul.f32 %v342_v1, %v46_v4 }
  0x19   :  { %v48_v7 = vadd.f32 %v342_v1, %v47_v5 }
  0x1b   :  { %v50_v9 = vsel %vm49_vm0, %v342_v1, %v48_v7 }
  0x1c   :  { %v51_v10 = vmul.f32 %v252_v6, %v50_v9 }
  0x1e   :  { %v52_v11 = vmax.f32 %v51_v10, 0.0 }
  0x20   :  { %v53_v13 = vmin.f32 %v52_v11, 33.0 }
  0x22   :  { %v331_v14 = vcvt.f32.s32 %v53_v13 }
  0x24   :  { %v455_v17 = vperm.slane %v331_v14, 0  ;;  %v89_v18 = vadd.s32 64, %v331_v14 }
  0x26   :  { %vm87_vm1 = vcmp.eq.s32.totalorder %v70_v15, %v455_v17  ;;  %v459_v20 = vperm.slane %v89_v18, 0  ;;  %vm88_vm2 = vcmp.eq.s32.totalorder %v71_v16, %v455_v17  ;;  %vm85_vm6 = vcmp.eq.s32.totalorder %v68_v19, %v455_v17 }
  0x27   :  { %vm86_vm9 = vcmp.eq.s32.totalorder %v69_v21, %v455_v17  ;;  %vm83_vm13 = vcmp.eq.s32.totalorder %v66_v22, %v455_v17  ;;  %vm84_vm0 = vcmp.eq.s32.totalorder %v67_v23, %v455_v17 }
  0x28   :  { %vm105_vm3 = vcmp.eq.s32.totalorder %v70_v15, %v459_v20  ;;  %vm106_vm4 = vcmp.eq.s32.totalorder %v71_v16, %v459_v20  ;;  %vm103_vm7 = vcmp.eq.s32.totalorder %v68_v19, %v459_v20  ;;  %vm104_vm10 = vcmp.eq.s32.totalorder %v69_v21, %v459_v20 }
  0x29   :  { %vm121_vm5 = vmor %vm87_vm1, %vm105_vm3  ;;  %vm101_vm14 = vcmp.eq.s32.totalorder %v66_v22, %v459_v20  ;;  %vm102_vm1 = vcmp.eq.s32.totalorder %v67_v23, %v459_v20 }
  0x2a   :  { %vm122_vm8 = vmor %vm88_vm2, %vm106_vm4  ;;  %vm81_vm4 = vcmp.eq.s32.totalorder %v64_v24, %v455_v17 }
  0x2b   :  { %vm285_vm11 = vmpackc.low %vm122_vm8, %vm121_vm5  ;;  %vm99_vm5 = vcmp.eq.s32.totalorder %v64_v24, %v459_v20  ;;  %vm100_vm8 = vcmp.eq.s32.totalorder %v65_v26, %v459_v20 }
  0x2c   :  { %286 = vmatpush.bf16.msk.msra.mxu0 %vm285_vm11, %v426_v25  ;;  %305 = vmatpush.bf16.msk.msra.mxu1 %vm285_vm11, %v426_v25  ;;  %vm119_vm12 = vmor %vm85_vm6, %vm103_vm7  ;;  %vm82_vm7 = vcmp.eq.s32.totalorder %v65_v26, %v455_v17 }
  0x2d   :  { %306 = vmatpush.bf16.msk.msra.mxu2 %vm285_vm11, %v426_v25  ;;  %307 = vmatpush.bf16.msk.msra.mxu3 %vm285_vm11, %v426_v25  ;;  %vm120_vm15 = vmor %vm86_vm9, %vm104_vm10  ;;  %vm79_vm11 = vcmp.eq.s32.totalorder %v62_v27, %v455_v17 }
  0x2e   :  { %vm287_vm2 = vmpackc.low %vm120_vm15, %vm119_vm12  ;;  %vm97_vm12 = vcmp.eq.s32.totalorder %v62_v27, %v459_v20  ;;  %vm98_vm15 = vcmp.eq.s32.totalorder %v63_v28, %v459_v20 }
  0x2f   :  { %vm117_vm3 = vmor %vm83_vm13, %vm101_vm14  ;;  %vm80_vm14 = vcmp.eq.s32.totalorder %v63_v28, %v455_v17 }
  0x30   :  { %288 = vmatpush.bf16.msk.msra.mxu0 %vm287_vm2, %v426_v25  ;;  %308 = vmatpush.bf16.msk.msra.mxu1 %vm287_vm2, %v426_v25  ;;  %vm118_vm6 = vmor %vm84_vm0, %vm102_vm1 }
  0x31   :  { %309 = vmatpush.bf16.msk.msra.mxu2 %vm287_vm2, %v426_v25  ;;  %310 = vmatpush.bf16.msk.msra.mxu3 %vm287_vm2, %v426_v25  ;;  %vm289_vm9 = vmpackc.low %vm118_vm6, %vm117_vm3  ;;  %vm77_vm2 = vcmp.eq.s32.totalorder %v60_v29, %v455_v17  ;;  %vm95_vm3 = vcmp.eq.s32.totalorder %v60_v29, %v459_v20  ;;  %vm96_vm6 = vcmp.eq.s32.totalorder %v61_v30, %v459_v20 }
  0x32   :  { %vm115_vm10 = vmor %vm81_vm4, %vm99_vm5  ;;  %vm78_vm5 = vcmp.eq.s32.totalorder %v61_v30, %v455_v17 }
  0x33   :  { %vm116_vm13 = vmor %vm82_vm7, %vm100_vm8 }
  0x34   :  { %290 = vmatpush.bf16.msk.msra.mxu0 %vm289_vm9, %v426_v25  ;;  %311 = vmatpush.bf16.msk.msra.mxu1 %vm289_vm9, %v426_v25  ;;  %vm499_vm0 = vmpackc.low %vm116_vm13, %vm115_vm10  ;;  %vm75_vm10 = vcmp.eq.s32.totalorder %v58_v32, %v455_v17  ;;  %vm94_vm13 = vcmp.eq.s32.totalorder %v59_v33, %v459_v20 }
  0x35   :  { %312 = vmatpush.bf16.msk.msra.mxu2 %vm289_vm9, %v426_v25  ;;  %313 = vmatpush.bf16.msk.msra.mxu3 %vm289_vm9, %v426_v25  ;;  %vm113_vm1 = vmor %vm79_vm11, %vm97_vm12  ;;  %vm93_vm11 = vcmp.eq.s32.totalorder %v58_v32, %v459_v20  ;;  %vm76_vm12 = vcmp.eq.s32.totalorder %v59_v33, %v455_v17 }
  0x36   :  { %vm114_vm4 = vmor %vm80_vm14, %vm98_vm15 }
  0x37   :  { %vm511_vm7 = vmpackc.low %vm114_vm4, %vm113_vm1  ;;  %vm73_vm1 = vcmp.eq.s32.totalorder %v451_v12, %v455_v17  ;;  %vm92_vm4 = vcmp.eq.s32.totalorder %v57_v36, %v459_v20 }
  0x38   :  { %292 = vmatpush.bf16.msk.msra.mxu0 %vm499_vm0, %v426_v25  ;;  %314 = vmatpush.bf16.msk.msra.mxu1 %vm499_vm0, %v426_v25  ;;  %vm111_vm8 = vmor %vm77_vm2, %vm95_vm3  ;;  %vm91_vm2 = vcmp.eq.s32.totalorder %v451_v12, %v459_v20  ;;  %vm74_vm3 = vcmp.eq.s32.totalorder %v57_v36, %v455_v17 }
  0x39   :  { %315 = vmatpush.bf16.msk.msra.mxu2 %vm499_vm0, %v426_v25  ;;  %316 = vmatpush.bf16.msk.msra.mxu3 %vm499_vm0, %v426_v25  ;;  %vm112_vm9 = vmor %vm78_vm5, %vm96_vm6 }
  0x3a   :  { %vm531_vm14 = vmpackc.low %vm112_vm9, %vm111_vm8 }
  0x3b   :  { %vm109_vm15 = vmor %vm75_vm10, %vm93_vm11 }
  0x3c   :  { %294 = vmatpush.bf16.msk.msra.mxu0 %vm511_vm7, %v426_v25  ;;  %317 = vmatpush.bf16.msk.msra.mxu1 %vm511_vm7, %v426_v25  ;;  %vm110_vm0 = vmor %vm76_vm12, %vm94_vm13 }
  0x3d   :  { %318 = vmatpush.bf16.msk.msra.mxu2 %vm511_vm7, %v426_v25  ;;  %319 = vmatpush.bf16.msk.msra.mxu3 %vm511_vm7, %v426_v25  ;;  %vm297_vm5 = vmpackc.low %vm110_vm0, %vm109_vm15 }
  0x3e   :  { %vm107_vm6 = vmor %vm73_vm1, %vm91_vm2 }
  0x3f   :  { %vm108_vm7 = vmor %vm74_vm3, %vm92_vm4 }
  0x40   :  { %296 = vmatpush.bf16.msk.msra.mxu0 %vm531_vm14, %v426_v25  ;;  %320 = vmatpush.bf16.msk.msra.mxu1 %vm531_vm14, %v426_v25  ;;  %vm299_vm8 = vmpackc.low %vm108_vm7, %vm107_vm6 }
  0x41   :  { %321 = vmatpush.bf16.msk.msra.mxu2 %vm531_vm14, %v426_v25  ;;  %322 = vmatpush.bf16.msk.msra.mxu3 %vm531_vm14, %v426_v25 }
  0x44   :  { %298 = vmatpush.bf16.msk.msra.mxu0 %vm297_vm5, %v426_v25  ;;  %323 = vmatpush.bf16.msk.msra.mxu1 %vm297_vm5, %v426_v25 }
  0x45   :  { %324 = vmatpush.bf16.msk.msra.mxu2 %vm297_vm5, %v426_v25  ;;  %325 = vmatpush.bf16.msk.msra.mxu3 %vm297_vm5, %v426_v25 }
  0x48   :  { %300 = vmatpush.bf16.msk.msra.mxu0 %vm299_vm8, %v426_v25  ;;  %326 = vmatpush.bf16.msk.msra.mxu1 %vm299_vm8, %v426_v25 }
  0x49   :  { %327 = vmatpush.bf16.msk.msra.mxu2 %vm299_vm8, %v426_v25  ;;  %328 = vmatpush.bf16.msk.msra.mxu3 %vm299_vm8, %v426_v25 }
  0x4b   :  { %203 = vmatmul.bf16.vlgmr.msra.gmra.mxu0 %v301_v37  ;;  %208 = vmatmul.bf16.vlgmr.msra.gmra.mxu1 %v302_v38 }
  0x4c   :  { %213 = vmatmul.bf16.vlgmr.msra.gmra.mxu2 %v303_v39  ;;  %218 = vmatmul.bf16.vlgmr.msra.gmra.mxu3 %v304_v40 }
  0xc8   :  { %v204_v41 = vpop.f32.mrf.mxu0  ;;  %v209_v42 = vpop.f32.mrf.mxu1 }
  0xc9   :  { %224 = vst [vmem:[#allocation7] sm:$0xff] %v204_v41 }
  0xca   :  { %226 = vst [vmem:[#allocation7 + $0x10] sm:$0xff] %v209_v42 }
  0xcf   :  { %v214_v43 = vpop.f32.mrf.mxu2  ;;  %v219_v44 = vpop.f32.mrf.mxu3 }
  0xd0   :  { %228 = vst [vmem:[#allocation7 + $0x20] sm:$0xff] %v214_v43  ;;  %v206_v45 = vpop.f32.mrf.mxu0  ;;  %v211_v46 = vpop.f32.mrf.mxu1 }
  0xd1   :  { %230 = vst [vmem:[#allocation7 + $0x30] sm:$0xff] %v219_v44 }
  0xd2   :  { %225 = vst [vmem:[#allocation7 + $0x8] sm:$0xff] %v206_v45 }
  0xd3   :  { %227 = vst [vmem:[#allocation7 + $0x18] sm:$0xff] %v211_v46 }
  0xd7   :  { %v216_v47 = vpop.f32.mrf.mxu2  ;;  %v221_v48 = vpop.f32.mrf.mxu3 }
  0xd8   :  { %229 = vst [vmem:[#allocation7 + $0x28] sm:$0xff] %v216_v47 }
  0xd9   :  { %231 = vst [vmem:[#allocation7 + $0x38] sm:$0xff] %v221_v48 }
  0xda   :  { %244 = dma.vmem_to_hbm [thread:$0]  %s237_s1, 1024, %s239_s23, [#allocation4], %s428_s24, %s428_s24, %s429_s25  }
  0xdb   :  { %419 = dma.done.wait [#allocation4], 1024  }
  0xdc   :  { %420 = vsyncadd [#allocation4], 4294966272 }
  0xdd   :  { %249 = vsyncpa [#allocation3], 1 }
  0xde   :  { %250 = vsyncpa [#allocation6], 1 }
  0xdf   :  { %251 = vsyncpa [#allocation4], 1 }

</bundles_post_ra>
